<compile_context>
chip_gen: v7x
topology: tpu7x:2x2x1
jax: 0.10.0
libtpu: 0.0.40
codegen_flags: <defaults>
</compile_context>

<pallas_src>
import jax
import jax.numpy as jnp
from jax.experimental import pallas as pl
from jax.experimental.pallas import tpu as pltpu


def warpnet_kernel(xT_ref, w1_ref, b1_ref, w2_ref, b2_ref, w3_ref, b3_ref, oT_ref):
    """Fused 3-layer MLP on one batch tile, batch on the 128-lane axis.

    xT_ref : (in_dim, tile_b)        w1_ref : (hid, in_dim)   b1_ref : (hid, 1)
    w2_ref : (hid, hid)              b2_ref : (hid, 1)
    w3_ref : (out_dim, hid)          b3_ref : (out_dim, 1)
    oT_ref : (out_dim, tile_b)
    """
    xT = xT_ref[...]                                    # bf16 or f32; MXU takes both natively

    # h1^T = relu(W1 @ x^T + b1)   -> (hid, tile_b), f32 accumulation on the MXU
    h1 = jnp.dot(w1_ref[...], xT, preferred_element_type=jnp.float32) + b1_ref[...]
    h1 = jnp.maximum(h1, 0.0)                           # ReLU in f32 (v5e has no bf16 VPU)

    # h2^T = relu(W2 @ h1^T + b2)  -> (hid, tile_b)
    h2 = jnp.dot(w2_ref[...], h1.astype(w2_ref.dtype),
                 preferred_element_type=jnp.float32) + b2_ref[...]
    h2 = jnp.maximum(h2, 0.0)

    # y^T = W3 @ h2^T + b3         -> (out_dim, tile_b)
    yT = jnp.dot(w3_ref[...], h2.astype(w3_ref.dtype),
                 preferred_element_type=jnp.float32) + b3_ref[...]

    # TODO(synk): if tile_b / hidden_dim ever grow so the (hid, tile_b) f32 intermediates
    # blow past the 64-vreg file, chunk the lane axis with lax.fori_loop(..., unroll=True).
    oT_ref[...] = yT.astype(oT_ref.dtype)


def warpnet_forward(x, params, *, tile_b=512, compute_dtype=None):
    """x: (N, input_dim). params: PyTorch-layout weights w*: (out, in), b*: (out, 1).

    compute_dtype=jnp.bfloat16 stores x and the weight matrices in bf16 for the MXU
    (biases and accumulation stay f32). Default None keeps everything f32.
    """
    w1, b1, w2, b2, w3, b3 = (
        params["w1"], params["b1"], params["w2"],
        params["b2"], params["w3"], params["b3"],
    )
    N, in_dim = x.shape
    hid = w1.shape[0]
    out_dim = w3.shape[0]
    out_dtype = x.dtype

    assert tile_b % 128 == 0, "tile_b must be a multiple of the 128-lane width"

    # Lane-dense layout: batch on the lane axis.
    xT = x.T                                            # (in_dim, N); in/out dims are tiny
    if compute_dtype is not None:
        xT = xT.astype(compute_dtype)
        w1, w2, w3 = (w.astype(compute_dtype) for w in (w1, w2, w3))
    b1, b2, b3 = (b.astype(jnp.float32) for b in (b1, b2, b3))

    # Pad batch to a lane multiple; for small N collapse the grid to a single step.
    n_lane = pl.cdiv(N, 128) * 128
    eff_tile = min(tile_b, n_lane)
    n_pad = pl.cdiv(n_lane, eff_tile) * eff_tile
    if n_pad != N:
        xT = jnp.pad(xT, ((0, 0), (0, n_pad - N)))

    grid = (n_pad // eff_tile,)

    in_specs = [
        pl.BlockSpec((in_dim, eff_tile), lambda i: (0, i)),   # x^T tile (lane-dense)
        pl.BlockSpec((hid, in_dim), lambda i: (0, 0)),        # w1 (VMEM-resident)
        pl.BlockSpec((hid, 1), lambda i: (0, 0)),             # b1
        pl.BlockSpec((hid, hid), lambda i: (0, 0)),           # w2
        pl.BlockSpec((hid, 1), lambda i: (0, 0)),             # b2
        pl.BlockSpec((out_dim, hid), lambda i: (0, 0)),       # w3
        pl.BlockSpec((out_dim, 1), lambda i: (0, 0)),         # b3
    ]
    out_specs = pl.BlockSpec((out_dim, eff_tile), lambda i: (0, i))

    yT = pl.pallas_call(
        warpnet_kernel,
        out_shape=jax.ShapeDtypeStruct((out_dim, n_pad), out_dtype),
        grid_spec=pltpu.PrefetchScalarGridSpec(
            num_scalar_prefetch=0,
            grid=grid,
            in_specs=in_specs,
            out_specs=out_specs,
        ),
        compiler_params=pltpu.CompilerParams(
            dimension_semantics=("parallel",),   # batch tiles shard across TCs on v7x
        ),
    )(xT, w1, b1, w2, b2, w3, b3)

    return yT[:, :N].T                                   # back to (N, out_dim)


def init_params(key, input_dim=3, hidden_dim=64, output_dim=3):
    """PyTorch nn.Linear-style init and storage: w (out, in), b (out, 1)."""
    ks = jax.random.split(key, 6)

    def linear(kw, kb, fan_in, fan_out):
        bound = 1.0 / jnp.sqrt(float(fan_in))
        w = jax.random.uniform(kw, (fan_out, fan_in), jnp.float32, -bound, bound)
        b = jax.random.uniform(kb, (fan_out, 1), jnp.float32, -bound, bound)
        return w, b

    w1, b1 = linear(ks[0], ks[1], input_dim, hidden_dim)
    w2, b2 = linear(ks[2], ks[3], hidden_dim, hidden_dim)
    w3, b3 = linear(ks[4], ks[5], hidden_dim, output_dim)
    return {"w1": w1, "b1": b1, "w2": w2, "b2": b2, "w3": w3, "b3": b3}


def warpnet_ref(x, p):
    h = jnp.maximum(x @ p["w1"].T + p["b1"].T, 0.0)
    h = jnp.maximum(h @ p["w2"].T + p["b2"].T, 0.0)
    return h @ p["w3"].T + p["b3"].T


if __name__ == "__main__":
    key = jax.random.PRNGKey(0)
    k_param, k_x1, k_x2 = jax.random.split(key, 3)

    params = init_params(k_param, input_dim=3, hidden_dim=64, output_dim=3)

    # Case 1: batch=128, f32 end-to-end (single grid step: tile covers whole batch).
    x = jax.random.normal(k_x1, (128, 3), dtype=jnp.float32)
    out = jax.block_until_ready(warpnet_forward(x, params))
    ref = warpnet_ref(x, params)
    assert out.shape == (128, 3)
    assert jnp.allclose(out, ref, atol=1e-5, rtol=1e-5), "f32 mismatch vs reference"

    # Case 2: non-multiple batch (exercises lane-axis padding), bf16 weights/activations.
    x2 = jax.random.normal(k_x2, (100, 3), dtype=jnp.float32)
    out2 = jax.block_until_ready(
        warpnet_forward(x2, params, compute_dtype=jnp.bfloat16))
    ref2 = warpnet_ref(x2, params)
    assert out2.shape == (100, 3)
    assert jnp.allclose(out2, ref2, atol=5e-2, rtol=5e-2), "bf16 mismatch vs reference"

    print("KERNEL_OK")
</pallas_src>

<mosaic_0001>
module attributes {stable_mosaic.version = 11 : i64} {
  func.func @warpnet_kernel(%arg0: i32, %arg1: memref<3x128xf32, #tpu.memory_space<vmem>>, %arg2: memref<64x3xf32, #tpu.memory_space<vmem>>, %arg3: memref<64x1xf32, #tpu.memory_space<vmem>>, %arg4: memref<64x64xf32, #tpu.memory_space<vmem>>, %arg5: memref<64x1xf32, #tpu.memory_space<vmem>>, %arg6: memref<3x64xf32, #tpu.memory_space<vmem>>, %arg7: memref<3x1xf32, #tpu.memory_space<vmem>>, %arg8: memref<3x128xf32, #tpu.memory_space<vmem>>) attributes {dimension_semantics = [#tpu.dimension_semantics<parallel>], iteration_bounds = array<i64: 1>, scalar_prefetch = 0 : i64, scratch_operands = 0 : i64, tpu.core_type = #tpu.core_type<tc>, window_params = [{transform_indices = @transform_0, window_bounds = array<i64: 3, 128>}, {pipeline_mode = #tpu.pipeline_mode<synchronous>, transform_indices = @transform_1, window_bounds = array<i64: 64, 3>}, {pipeline_mode = #tpu.pipeline_mode<synchronous>, transform_indices = @transform_2, window_bounds = array<i64: 64, 1>}, {pipeline_mode = #tpu.pipeline_mode<synchronous>, transform_indices = @transform_3, window_bounds = array<i64: 64, 64>}, {pipeline_mode = #tpu.pipeline_mode<synchronous>, transform_indices = @transform_4, window_bounds = array<i64: 64, 1>}, {pipeline_mode = #tpu.pipeline_mode<synchronous>, transform_indices = @transform_5, window_bounds = array<i64: 3, 64>}, {pipeline_mode = #tpu.pipeline_mode<synchronous>, transform_indices = @transform_6, window_bounds = array<i64: 3, 1>}, {transform_indices = @transform_7, window_bounds = array<i64: 3, 128>}]} {
    %c0 = arith.constant 0 : index
    %c0_0 = arith.constant 0 : index
    %0 = vector.load %arg1[%c0, %c0_0] : memref<3x128xf32, #tpu.memory_space<vmem>>, vector<3x128xf32>
    %c0_1 = arith.constant 0 : index
    %c0_2 = arith.constant 0 : index
    %1 = vector.load %arg2[%c0_1, %c0_2] : memref<64x3xf32, #tpu.memory_space<vmem>>, vector<64x3xf32>
    %cst = arith.constant dense<0.000000e+00> : vector<64x128xf32>
    %2 = tpu.matmul %1, %0, %cst {dimension_numbers = #tpu.dot_dimension_numbers<[1], [0], [0], [1], [0, 0, 1, 1], [], []>} : vector<64x3xf32>, vector<3x128xf32>, vector<64x128xf32> -> vector<64x128xf32>
    %c0_3 = arith.constant 0 : index
    %c0_4 = arith.constant 0 : index
    %3 = vector.load %arg3[%c0_3, %c0_4] : memref<64x1xf32, #tpu.memory_space<vmem>>, vector<64x1xf32>
    %4 = vector.broadcast %3 : vector<64x1xf32> to vector<64x128xf32>
    %5 = arith.addf %2, %4 : vector<64x128xf32>
    %cst_5 = arith.constant 0.000000e+00 : f32
    %6 = vector.broadcast %cst_5 : f32 to vector<64x128xf32>
    %7 = arith.maximumf %5, %6 : vector<64x128xf32>
    %c0_6 = arith.constant 0 : index
    %c0_7 = arith.constant 0 : index
    %8 = vector.load %arg4[%c0_6, %c0_7] : memref<64x64xf32, #tpu.memory_space<vmem>>, vector<64x64xf32>
    %cst_8 = arith.constant dense<0.000000e+00> : vector<64x128xf32>
    %9 = tpu.matmul %8, %7, %cst_8 {dimension_numbers = #tpu.dot_dimension_numbers<[1], [0], [0], [1], [0, 0, 1, 1], [], []>} : vector<64x64xf32>, vector<64x128xf32>, vector<64x128xf32> -> vector<64x128xf32>
    %c0_9 = arith.constant 0 : index
    %c0_10 = arith.constant 0 : index
    %10 = vector.load %arg5[%c0_9, %c0_10] : memref<64x1xf32, #tpu.memory_space<vmem>>, vector<64x1xf32>
    %11 = vector.broadcast %10 : vector<64x1xf32> to vector<64x128xf32>
    %12 = arith.addf %9, %11 : vector<64x128xf32>
    %cst_11 = arith.constant 0.000000e+00 : f32
    %13 = vector.broadcast %cst_11 : f32 to vector<64x128xf32>
    %14 = arith.maximumf %12, %13 : vector<64x128xf32>
    %c0_12 = arith.constant 0 : index
    %c0_13 = arith.constant 0 : index
    %15 = vector.load %arg6[%c0_12, %c0_13] : memref<3x64xf32, #tpu.memory_space<vmem>>, vector<3x64xf32>
    %cst_14 = arith.constant dense<0.000000e+00> : vector<3x128xf32>
    %16 = tpu.matmul %15, %14, %cst_14 {dimension_numbers = #tpu.dot_dimension_numbers<[1], [0], [0], [1], [0, 0, 1, 1], [], []>} : vector<3x64xf32>, vector<64x128xf32>, vector<3x128xf32> -> vector<3x128xf32>
    %c0_15 = arith.constant 0 : index
    %c0_16 = arith.constant 0 : index
    %17 = vector.load %arg7[%c0_15, %c0_16] : memref<3x1xf32, #tpu.memory_space<vmem>>, vector<3x1xf32>
    %18 = vector.broadcast %17 : vector<3x1xf32> to vector<3x128xf32>
    %19 = arith.addf %16, %18 : vector<3x128xf32>
    %c0_17 = arith.constant 0 : index
    %c0_18 = arith.constant 0 : index
    %20 = vector.load %arg8[%c0_17, %c0_18] : memref<3x128xf32, #tpu.memory_space<vmem>>, vector<3x128xf32>
    tpu.vector_store %arg8[%c0_17, %c0_18], %19 {strides = array<i32>} : memref<3x128xf32, #tpu.memory_space<vmem>>, vector<3x128xf32>,
    return
  }
  func.func @transform_0(%arg0: i32) -> (i32, i32) {
    %c0_i32 = arith.constant 0 : i32
    %c0_i32_0 = arith.constant 0 : i32
    return %c0_i32, %arg0 : i32, i32
  }
  func.func @transform_1(%arg0: i32) -> (i32, i32) {
    %c0_i32 = arith.constant 0 : i32
    %c0_i32_0 = arith.constant 0 : i32
    %c0_i32_1 = arith.constant 0 : i32
    return %c0_i32, %c0_i32_0 : i32, i32
  }
  func.func @transform_2(%arg0: i32) -> (i32, i32) {
    %c0_i32 = arith.constant 0 : i32
    %c0_i32_0 = arith.constant 0 : i32
    %c0_i32_1 = arith.constant 0 : i32
    return %c0_i32, %c0_i32_0 : i32, i32
  }
  func.func @transform_3(%arg0: i32) -> (i32, i32) {
    %c0_i32 = arith.constant 0 : i32
    %c0_i32_0 = arith.constant 0 : i32
    %c0_i32_1 = arith.constant 0 : i32
    return %c0_i32, %c0_i32_0 : i32, i32
  }
  func.func @transform_4(%arg0: i32) -> (i32, i32) {
    %c0_i32 = arith.constant 0 : i32
    %c0_i32_0 = arith.constant 0 : i32
    %c0_i32_1 = arith.constant 0 : i32
    return %c0_i32, %c0_i32_0 : i32, i32
  }
  func.func @transform_5(%arg0: i32) -> (i32, i32) {
    %c0_i32 = arith.constant 0 : i32
    %c0_i32_0 = arith.constant 0 : i32
    %c0_i32_1 = arith.constant 0 : i32
    return %c0_i32, %c0_i32_0 : i32, i32
  }
  func.func @transform_6(%arg0: i32) -> (i32, i32) {
    %c0_i32 = arith.constant 0 : i32
    %c0_i32_0 = arith.constant 0 : i32
    %c0_i32_1 = arith.constant 0 : i32
    return %c0_i32, %c0_i32_0 : i32, i32
  }
  func.func @transform_7(%arg0: i32) -> (i32, i32) {
    %c0_i32 = arith.constant 0 : i32
    %c0_i32_0 = arith.constant 0 : i32
    return %c0_i32, %arg0 : i32, i32
  }
}

</mosaic_0001>

<bundles_post_ra>
// kernel: tpu_custom_call.1
= control target key start
LH: loop header
LB: loop body
LE: loop exit
PB: predicated region body
PF: predicated region fallthrough
CT: control target
= control target key end

     0   :  { %vm109_vm0 = vcmask 1042432   ;;  %vm84_vm1 = vcmask 23552   ;;  %v687_v4 = vmov 0   ;;  %s866_s0 = inlined_call_operand.vmem [shape: f32[3,128], index: 0, kind: input, shape index: {}]   ;;  %s867_s1 = inlined_call_operand.vmem [shape: f32[64,3], index: 1, kind: input, shape index: {}]   ;;  %s868_s2 = inlined_call_operand.vmem [shape: f32[64,1], index: 2, kind: input, shape index: {}]   ;;  %s869_s3 = inlined_call_operand.vmem [shape: f32[64,64], index: 3, kind: input, shape index: {}]   ;;  %s870_s4 = inlined_call_operand.vmem [shape: f32[64,1], index: 4, kind: input, shape index: {}]   ;;  %s871_s5 = inlined_call_operand.vmem [shape: f32[3,64], index: 5, kind: input, shape index: {}]   ;;  %s872_s6 = inlined_call_operand.vmem [shape: f32[3,1], index: 6, kind: input, shape index: {}]   ;;  %s873_s7 = inlined_call_operand.hbm [shape: f32[3,128], index: 7, kind: output, shape index: {}]  }
   0x1   :  { %v27_v0 = vld [vmem:[%s866_s0] sm:$0x7]  ;;  %v29_v2 = vld [vmem:[%s867_s1 + $0x8] sm:$0xff]  ;;  %v30_v3 = vld [vmem:[%s867_s1 + $0x10] sm:$0xff]  ;;  %661 = vset.pattern.permute.xlu0 %v687_v4  ;;  %662 = vset.pattern.permute.xlu1 %v687_v4 }
   0x2   :  { %v28_v1 = vld [vmem:[%s867_s1] sm:$0xff]  ;;  %567 = vmatprep.subr.msk.mxu0 %vm109_vm0, %v27_v0  ;;  %v38_v6 = vld [vmem:[%s868_s2 + $0x10] sm:$0xff]  ;;  %v31_v7 = vld [vmem:[%s867_s1 + $0x18] sm:$0xff] }
   0x3   :  { %569 = vmatprep.mubr.msk.f32.mxu0 %vm84_vm1, %v28_v1  ;;  %568 = vmatpush3.msk.msra.mxu0 %vm109_vm0, %v27_v0  ;;  %v36_v5 = vld [vmem:[%s868_s2] sm:$0xff]  ;;  %v37_v9 = vld [vmem:[%s868_s2 + $0x8] sm:$0xff]  ;;  %v39_v10 = vld [vmem:[%s868_s2 + $0x18] sm:$0xff] }
   0x4   :  { %570 = vmatmul.mubr.msk.f32.vlgmr.msra.gmra.mrb[0].mxu0 %vm84_vm1, %v29_v2  ;;  %46 = vperm.xlu0 %661, %v36_v5   ;;  %v32_v8 = vld [vmem:[%s867_s1 + $0x20] sm:$0xff]  ;;  %v33_v11 = vld [vmem:[%s867_s1 + $0x28] sm:$0xff] }
   0x5   :  { %572 = vmatprep.mubr.msk.f32.mxu0 %vm84_vm1, %v30_v3  ;;  %56 = vperm.xlu1 %662, %v38_v6  }
   0x8   :  { %573 = vmatmul.mubr.msk.f32.gmra.mrb[2].mxu0 %vm84_vm1, %v31_v7  ;;  %51 = vperm.xlu0 %661, %v37_v9  }
   0x9   :  { %575 = vmatprep.mubr.msk.f32.mxu0 %vm84_vm1, %v32_v8 }
   0xa   :  { %12 = vsyncpa [#allocation3], 0  ;;  %v34_v12 = vld [vmem:[%s867_s1 + $0x30] sm:$0xff]  ;;  %v40_v13 = vld [vmem:[%s868_s2 + $0x20] sm:$0xff]  ;;  %61 = vperm.xlu1 %662, %v39_v10   ;;  %vm282_vm2 = vcmask 523264   ;;  %v688_v7 = vmov 0.0|0.0  }
   0xb   :  { %v41_v14 = vld [vmem:[%s868_s2 + $0x28] sm:$0xff]  ;;  %v35_v15 = vld [vmem:[%s867_s1 + $0x38] sm:$0xff]  ;;  %v42_v16 = vld [vmem:[%s868_s2 + $0x30] sm:$0xff]  ;;  %644 = vmatprep.subr.bf16.mxu0 %v688_v7  ;;  %vm689_vm3 = vmmov 0   ;;  %v690_v8 = vmov 0.0  }
   0xc   :  { %576 = vmatmul.mubr.msk.f32.gmra.mrb[4].mxu0 %vm84_vm1, %v33_v11  ;;  %66 = vperm.xlu0 %661, %v40_v13   ;;  %v43_v17 = vld [vmem:[%s868_s2 + $0x38] sm:$0xff]  ;;  %v234_v18 = vld [vmem:[%s870_s4] sm:$0xff]  ;;  %v235_v19 = vld [vmem:[%s870_s4 + $0x8] sm:$0xff]  ;;  %s691_s2 = smov [#allocation2]  }
   0xd   :  { %578 = vmatprep.mubr.msk.f32.mxu0 %vm84_vm1, %v34_v12  ;;  %v236_v20 = vld [vmem:[%s870_s4 + $0x10] sm:$0xff]  ;;  %v237_v21 = vld [vmem:[%s870_s4 + $0x18] sm:$0xff]  ;;  %v238_v22 = vld [vmem:[%s870_s4 + $0x20] sm:$0xff]  ;;  %s507_s16 = sshll.u32 %s691_s2, 4  ;;  %s508_s16 = int_to_ptr.vmem [resolvable:$true] %s507_s16 }
   0xe   :  { %71 = vperm.xlu1 %662, %v41_v14   ;;  %v239_v23 = vld [vmem:[%s870_s4 + $0x28] sm:$0xff]  ;;  %v240_v24 = vld [vmem:[%s870_s4 + $0x30] sm:$0xff]  ;;  %v241_v25 = vld [vmem:[%s870_s4 + $0x38] sm:$0xff]  ;;  %s663_s17 = scalar_lea.vmem %s508_s16, 64  ;;  %p668_p1 = scmp.lt.s32.totalorder %s508_s16, %s508_s16 }
   0xf   :  { %v421_v26 = vld [vmem:[%s872_s6] sm:$0x7]  ;;  %v227_v0 = vld [vmem:[%s869_s3 + $0x8] sm:$0xff]  ;;  %v228_v1 = vld [vmem:[%s869_s3 + $0x10] sm:$0xff]  ;;  %p664_p0 = scmp.ne.s32.totalorder %s508_s16, %s663_s17  ;;  %p669_p2 = scmp.lt.s32.totalorder %s663_s17, %s663_s17 }
  0x10   :  { %579 = vmatmul.mubr.msk.f32.gmra.mrb[6].mxu0 %vm84_vm1, %v35_v15  ;;  %76 = vperm.xlu0 %661, %v42_v16   ;;  %v226_v27 = vld [vmem:[%s869_s3] sm:$0xff]  ;;  %v229_v2 = vld [vmem:[%s869_s3 + $0x18] sm:$0xff]  ;;  %v231_v4 = vld [vmem:[%s869_s3 + $0x28] sm:$0xff] }
  0x11   :  { %597 = vmatprep.mubr.msk.f32.mxu1 %vm282_vm2, %v226_v27  ;;  %v230_v3 = vld [vmem:[%s869_s3 + $0x20] sm:$0xff]  ;;  %v232_v5 = vld [vmem:[%s869_s3 + $0x30] sm:$0xff]  ;;  %v233_v6 = vld [vmem:[%s869_s3 + $0x38] sm:$0xff]  ;;  %625 = vmatprep.mubr.msk.f32.mxu0 %vm689_vm3, %v690_v8  ;;  %p670_p3 = por %p669_p2, %p668_p1 }
  0x12   :  { %81 = vperm.xlu1 %662, %v43_v17  }
  0x13   :  { %p671_p4 = pnand %p670_p3, %p664_p0 }
  0x14   :  { %244 = vperm.xlu0 %661, %v234_v18  }
  0x16   :  { %249 = vperm.xlu1 %662, %v235_v19  }
  0x18   :  { %254 = vperm.xlu0 %661, %v236_v20  }
  0x1a   :  { %259 = vperm.xlu1 %662, %v237_v21  }
  0x1c   :  { %264 = vperm.xlu0 %661, %v238_v22  }
  0x1e   :  { %269 = vperm.xlu1 %662, %v239_v23  }
  0x20   :  { %274 = vperm.xlu0 %661, %v240_v24  }
  0x22   :  { %279 = vperm.xlu1 %662, %v241_v25  }
  0x24   :  { %424 = vperm.xlu0 %661, %v421_v26  }
  0x83   :  { %v47_v28 = vpop.permute.xlu0 %46 }
  0x84   :  { %v57_v29 = vpop.permute.xlu1 %56 }
  0x87   :  { %v52_v30 = vpop.permute.xlu0 %51 }
  0x89   :  { %v62_v31 = vpop.permute.xlu1 %61 }
  0x8b   :  { %v67_v44 = vpop.permute.xlu0 %66 }
  0x8d   :  { %v72_v41 = vpop.permute.xlu1 %71 }
  0x8f   :  { %v77_v56 = vpop.permute.xlu0 %76 }
  0x91   :  { %v82_v53 = vpop.permute.xlu1 %81 }
  0x93   :  { %v245_v10 = vpop.permute.xlu0 %244 }
  0x95   :  { %v250_v9 = vpop.permute.xlu1 %249 }
  0x97   :  { %v255_v13 = vpop.permute.xlu0 %254 }
  0x99   :  { %v260_v11 = vpop.permute.xlu1 %259 }
  0x9b   :  { %v265_v25 = vpop.permute.xlu0 %264 }
  0x9d   :  { %v270_v22 = vpop.permute.xlu1 %269 }
  0xd7   :  { %v571_v32 = vpop.f32.mrb[0].mxu0 }
  0xd8   :  { %v185_v33 = vadd.f32 %v571_v32, %v52_v30  ;;  %v179_v34 = vpop.f32.mrb[1].mxu0 }
  0xd9   :  { %v180_v35 = vadd.f32 %v179_v34, %v47_v28  ;;  %v280_v34 = vpop.permute.xlu1 %279 }
  0xda   :  { %v219_v36 = vmax.f32 %v185_v33, 0.0 }
  0xdb   :  { %v218_v37 = vmax.f32 %v180_v35, 0.0  ;;  %v574_v38 = vpop.f32.mrb[2].mxu0 }
  0xdc   :  { %v195_v39 = vadd.f32 %v574_v38, %v62_v31  ;;  %v189_v40 = vpop.f32.mrb[3].mxu0 }
  0xdd   :  { %v190_v42 = vadd.f32 %v189_v40, %v57_v29  ;;  %v628_v43 = vpack.c.bf16 %v219_v36, %v218_v37  ;;  %v275_v37 = vpop.permute.xlu0 %274 }
  0xde   :  { %v221_v45 = vmax.f32 %v195_v39, 0.0 }
  0xdf   :  { %v220_v46 = vmax.f32 %v190_v42, 0.0  ;;  %v577_v47 = vpop.f32.mrb[4].mxu0  ;;  %629 = vmatprep.subr.bf16.mxu1 %v628_v43 }
  0xe0   :  { %v205_v48 = vadd.f32 %v577_v47, %v72_v41  ;;  %v199_v49 = vpop.f32.mrb[5].mxu0  ;;  %631 = vmatpush3.bf16.msra.mxu1 %v628_v43 }
  0xe1   :  { %v632_v50 = vpack.c.bf16 %v221_v45, %v220_v46  ;;  %v200_v51 = vadd.f32 %v199_v49, %v67_v44  ;;  %v420_v45 = vld [vmem:[%s871_s5] sm:$0x7]  ;;  %v425_v46 = vpop.permute.xlu0 %424 }
  0xe2   :  { %v223_v52 = vmax.f32 %v205_v48, 0.0 }
  0xe3   :  { %v222_v54 = vmax.f32 %v200_v51, 0.0  ;;  %v580_v55 = vpop.f32.mrb[6].mxu0  ;;  %633 = vmatprep.subr.bf16.mxu1 %v632_v50 }
  0xe4   :  { %v215_v57 = vadd.f32 %v580_v55, %v82_v53  ;;  %v209_v58 = vpop.f32.mrb[7].mxu0  ;;  %635 = vmatpush3.bf16.msra.mxu1 %v632_v50 }
  0xe5   :  { %v636_v59 = vpack.c.bf16 %v223_v52, %v222_v54  ;;  %v210_v60 = vadd.f32 %v209_v58, %v77_v56 }
  0xe6   :  { %v225_v61 = vmax.f32 %v215_v57, 0.0 }
  0xe7   :  { %v224_v62 = vmax.f32 %v210_v60, 0.0  ;;  %637 = vmatprep.subr.bf16.mxu1 %v636_v59 }
  0xe8   :  { %639 = vmatpush3.bf16.msra.mxu1 %v636_v59 }
  0xe9   :  { %v640_v63 = vpack.c.bf16 %v225_v61, %v224_v62 }
  0xeb   :  { %641 = vmatprep.subr.bf16.mxu1 %v640_v63 }
  0xec   :  { %643 = vmatpush3.bf16.msra.mxu1 %v640_v63 }
  0xef   :  { %598 = vmatmul.mubr.msk.f32.vlgmr.msra.gmra.mrb[0].mxu1 %vm282_vm2, %v227_v0 }
  0xf0   :  { %600 = vmatprep.mubr.msk.f32.mxu1 %vm282_vm2, %v228_v1 }
  0xf3   :  { %601 = vmatmul.mubr.msk.f32.gmra.mrb[2].mxu1 %vm282_vm2, %v229_v2 }
  0xf4   :  { %603 = vmatprep.mubr.msk.f32.mxu1 %vm282_vm2, %v230_v3 }
  0xf7   :  { %604 = vmatmul.mubr.msk.f32.gmra.mrb[4].mxu1 %vm282_vm2, %v231_v4 }
  0xf8   :  { %606 = vmatprep.mubr.msk.f32.mxu1 %vm282_vm2, %v232_v5 }
  0xfb   :  { %607 = vmatmul.mubr.msk.f32.gmra.mrb[6].mxu1 %vm282_vm2, %v233_v6 }
 0x1c2   :  { %v599_v12 = vpop.f32.mrb[0].mxu1 }
 0x1c3   :  { %v379_v14 = vadd.f32 %v599_v12, %v250_v9  ;;  %v373_v15 = vpop.f32.mrb[1].mxu1 }
 0x1c4   :  { %v374_v16 = vadd.f32 %v373_v15, %v245_v10 }
 0x1c5   :  { %v413_v17 = vmax.f32 %v379_v14, 0.0 }
 0x1c6   :  { %v412_v18 = vmax.f32 %v374_v16, 0.0  ;;  %v602_v19 = vpop.f32.mrb[2].mxu1 }
 0x1c7   :  { %v389_v20 = vadd.f32 %v602_v19, %v260_v11  ;;  %v383_v21 = vpop.f32.mrb[3].mxu1 }
 0x1c8   :  { %v645_v23 = vpack.c.bf16 %v413_v17, %v412_v18  ;;  %v384_v24 = vadd.f32 %v383_v21, %v255_v13 }
 0x1c9   :  { %v415_v26 = vmax.f32 %v389_v20, 0.0 }
 0x1ca   :  { %v414_v27 = vmax.f32 %v384_v24, 0.0  ;;  %v605_v28 = vpop.f32.mrb[4].mxu1  ;;  %646 = vmatpush3.bf16.msra.mxu0 %v645_v23 }
 0x1cb   :  { %v399_v29 = vadd.f32 %v605_v28, %v270_v22  ;;  %v393_v30 = vpop.f32.mrb[5].mxu1  ;;  %647 = vmatprep.subr.bf16.mxu0 %v688_v7 }
 0x1cc   :  { %v648_v31 = vpack.c.bf16 %v415_v26, %v414_v27  ;;  %v394_v32 = vadd.f32 %v393_v30, %v265_v25 }
 0x1cd   :  { %v417_v33 = vmax.f32 %v399_v29, 0.0 }
 0x1ce   :  { %v416_v35 = vmax.f32 %v394_v32, 0.0  ;;  %v608_v36 = vpop.f32.mrb[6].mxu1  ;;  %649 = vmatpush3.bf16.msra.mxu0 %v648_v31 }
 0x1cf   :  { %v409_v38 = vadd.f32 %v608_v36, %v280_v34  ;;  %v403_v39 = vpop.f32.mrb[7].mxu1  ;;  %650 = vmatprep.subr.bf16.mxu0 %v688_v7 }
 0x1d0   :  { %v651_v40 = vpack.c.bf16 %v417_v33, %v416_v35  ;;  %v404_v41 = vadd.f32 %v403_v39, %v275_v37 }
 0x1d1   :  { %v419_v42 = vmax.f32 %v409_v38, 0.0 }
 0x1d2   :  { %v418_v43 = vmax.f32 %v404_v41, 0.0  ;;  %652 = vmatpush3.bf16.msra.mxu0 %v651_v40 }
 0x1d3   :  { %653 = vmatprep.subr.bf16.mxu0 %v688_v7 }
 0x1d4   :  { %v654_v44 = vpack.c.bf16 %v419_v42, %v418_v43 }
 0x1d6   :  { %655 = vmatpush3.bf16.msra.mxu0 %v654_v44 }
 0x1d9   :  { %626 = vmatmul.mubr.msk.f32.vlgmr.msra.gmra.mrb[8].mxu0 %vm282_vm2, %v420_v45 }
 0x2ac   :  { %v496_v47 = vpop.f32.mrb[8].mxu0 }
 0x2ad   :  { %v497_v48 = vadd.f32 %v496_v47, %v425_v46  ;;  %v627_v49 = vpop.f32.mrb[9].mxu0 }
 0x2af   :  { %500 = vst [vmem:[#allocation2] sm:$0x7] %v497_v48 }
 0x2b0   :  { %674 = shalt.err (!%p671_p4)
}
 0x2b1   :  { %s675_s5 = scalar_lea.hbm %s873_s7, 64 }
 0x2b2   :  { %p676_p5 = scmp.ne.s32.totalorder %s873_s7, %s675_s5  ;;  %p679_p6 = scmp.lt.u32.totalorder %s675_s5, %s873_s7 }
 0x2b4   :  { %p681_p7 = pnand %p679_p6, %p676_p5 }
 0x2b6   :  { %684 = shalt.err (!%p681_p7)
}
 0x2b7   :  { %510 = dma.vmem_to_hbm [thread:$0]  %s508_s16, 64, %s873_s7, [#allocation3]  }
 0x2b8   :  { %685 = dma.done.wait [#allocation3], 64  }
 0x2b9   :  { %686 = vsyncadd [#allocation3], 4294967232 }
 0x2ba   :  { %514 = vsyncpa [#allocation3], 1 }

</bundles_post_ra>
